<compile_context>
chip_gen: v6e
topology: v6e:2x2x1
jax: 0.10.0
libtpu: 0.0.40
codegen_flags: <defaults>
</compile_context>

<pallas_src>
import jax
import jax.numpy as jnp
from jax.experimental import pallas as pl
from jax.experimental.pallas import tpu as pltpu


def _round_up(n, m):
    return ((n + m - 1) // m) * m


# ----------------------------------------------------------------------------
# Kernel: VPU/XLU-only MLP for hidden_size == 1, lane-dense batch layout.
# ----------------------------------------------------------------------------
def _subnet_kernel(scal_ref, xT_ref, wpack_ref, o_ref):
    """scal_ref  : SMEM (3,) f32            -> [b1, w2, b2]
       xT_ref    : VMEM (F, TM)             -> batch on lanes
       wpack_ref : VMEM (F_pad+2*out_pad,1) -> rows [0:F]=w1,
                                               [F_pad:F_pad+out]=w3,
                                               [F_pad+out_pad:+out]=b3
       o_ref     : VMEM (out, TM)           -> lane-dense output slab
    """
    f = xT_ref.shape[0]
    out = o_ref.shape[0]
    f_pad = _round_up(f, 8)
    out_pad = _round_up(out, 8)

    x = xT_ref[...]                                        # (F, TM)

    # Layer 1: Linear(F -> 1) + ReLU  == broadcast mul + sublane (XLU) reduce.
    w1 = wpack_ref[0:f, :]                                 # (F, 1)
    h = jnp.sum(x * w1, axis=0, keepdims=True)             # (1, TM)
    h = jnp.maximum(h + scal_ref[0], 0.0)                  # + b1, ReLU

    # Layer 2: Linear(1 -> 1) + ReLU  == scalar FMA on the hidden row.
    h = jnp.maximum(h * scal_ref[1] + scal_ref[2], 0.0)    # * w2 + b2, ReLU

    # Layer 3: Linear(1 -> out)  == outer-product broadcast FMA, lane-dense.
    w3 = wpack_ref[f_pad:f_pad + out, :]                   # (out, 1)
    b3 = wpack_ref[f_pad + out_pad:f_pad + out_pad + out, :]
    o_ref[...] = (w3 * h + b3).astype(o_ref.dtype)         # (out, TM)


# ----------------------------------------------------------------------------
# Parameter packing (hoist out of the per-call path; call once at init).
# ----------------------------------------------------------------------------
def pack_subnet_params(params):
    w1, b1, w2, b2, w3, b3 = params
    f = w1.shape[0]
    out = w3.shape[1]
    f_pad = _round_up(f, 8)
    out_pad = _round_up(out, 8)

    scal = jnp.concatenate(
        [b1.reshape(1), w2.reshape(1), b2.reshape(1)]).astype(jnp.float32)  # (3,)

    def _pad_rows(col, rows):
        return jnp.pad(col, ((0, rows - col.shape[0]), (0, 0)))

    wpack = jnp.concatenate(
        [_pad_rows(w1.reshape(f, 1).astype(jnp.float32), f_pad),
         _pad_rows(w3.reshape(out, 1).astype(jnp.float32), out_pad),
         _pad_rows(b3.reshape(out, 1).astype(jnp.float32), out_pad)],
        axis=0)                                            # (F_pad + 2*out_pad, 1)
    return scal, wpack


# ----------------------------------------------------------------------------
# Tile choice: lane-dense batch tiles.
# ----------------------------------------------------------------------------
def _choose_tile(batch):
    if batch <= 128:
        return batch                       # single full-extent tile
    # Multiples of 128 on the lane axis; big enough to carry MiBs per step
    # (per-step pipeline overhead ~0.35us), >=2 steps so v7x megacore has
    # work for both TensorCores, capped so double-buffered VMEM stays ~10 MiB
    # (well under the 32 MiB scoped default, incl. v7x's 64 MiB physical).
    tm_cap = 128 * 1024
    tm = _round_up(pl.cdiv(batch, 2), 128)
    return min(tm, tm_cap)


# ----------------------------------------------------------------------------
# Forward wrapper (replicates SubNet.forward, time == 1 branch).
# ----------------------------------------------------------------------------
def subnet_forward(x, params, *, last=False, output_size=3, packed=None,
                   use_pallas=None):
    """x: (B, state_dim) float32  ->  (B, 1, output_size) float32."""
    if last:
        # Pure slicing branch — no compute; keep as plain JAX glue.
        return x[:, x.shape[1] - output_size:][:, None, :]

    w1, b1, w2, b2, w3, b3 = params
    B, F = x.shape
    out = w3.shape[1]
    assert w1.shape[1] == 1, "kernel specialization assumes hidden_size == 1"

    if use_pallas is None:
        # Below a few thousand rows the whole problem is <1 KB; plain fused
        # XLA beats pallas_call launch + DMA setup + pipeline prologue.
        use_pallas = B >= 4096
    if not use_pallas:
        h = jnp.maximum(x @ w1 + b1, 0.0)
        h = jnp.maximum(h @ w2 + b2, 0.0)
        return (h @ w3 + b3)[:, None, :]

    if packed is None:
        packed = pack_subnet_params(params)   # prefer hoisting this to init
    scal, wpack = packed
    wrows = wpack.shape[0]

    xT = x.T.astype(jnp.float32)              # (F, B) lane-dense batch layout

    tm = _choose_tile(B)
    grid = (pl.cdiv(B, tm),)

    yT = pl.pallas_call(
        _subnet_kernel,
        out_shape=jax.ShapeDtypeStruct((out, B), jnp.float32),
        grid=grid,
        in_specs=[
            pl.BlockSpec(memory_space=pltpu.MemorySpace.SMEM),   # [b1,w2,b2]
            pl.BlockSpec((F, tm), lambda i: (0, i)),             # x tile (F, TM)
            pl.BlockSpec((wrows, 1), lambda i: (0, 0)),          # packed params
        ],
        out_specs=pl.BlockSpec((out, tm), lambda i: (0, i)),     # (out, TM)
        compiler_params=pltpu.CompilerParams(
            dimension_semantics=("parallel",)),
    )(scal, xT, wpack)

    # (out, B) -> (B, out) -> unsqueeze(1) -> (B, 1, out); both tiny/metadata.
    return yT.T[:, None, :]


# ----------------------------------------------------------------------------
# Init matching weights_init_normal: weight ~ N(0, 1/sqrt(in)), bias = 0.
# Weights stored as (in, out) = PyTorch weight.T for x @ W layout.
# ----------------------------------------------------------------------------
def init_subnet_params(key, input_size=7, hidden_size=1, output_size=3):
    k1, k2, k3 = jax.random.split(key, 3)
    w1 = jax.random.normal(k1, (input_size, hidden_size), jnp.float32) / jnp.sqrt(
        jnp.float32(input_size))
    b1 = jnp.zeros((1, hidden_size), jnp.float32)
    w2 = jax.random.normal(k2, (hidden_size, hidden_size), jnp.float32) / jnp.sqrt(
        jnp.float32(hidden_size))
    b2 = jnp.zeros((1, hidden_size), jnp.float32)
    w3 = jax.random.normal(k3, (hidden_size, output_size), jnp.float32) / jnp.sqrt(
        jnp.float32(hidden_size))
    b3 = jnp.zeros((1, output_size), jnp.float32)
    return (w1, b1, w2, b2, w3, b3)


def _reference_forward(x, params):
    w1, b1, w2, b2, w3, b3 = params
    h = jnp.maximum(x @ w1 + b1, 0.0)
    h = jnp.maximum(h @ w2 + b2, 0.0)
    return (h @ w3 + b3)[:, None, :]


if __name__ == "__main__":
    key = jax.random.PRNGKey(0)
    k_x, k_p, k_x2 = jax.random.split(key, 3)

    B, input_size, hidden_size, output_size = 8, 7, 1, 3
    # x.shape = (B, state_dim = num_of_stocks*2 + num_of_market_fac) = (8, 7)
    x = jax.random.normal(k_x, (B, input_size), jnp.float32)

    params = init_subnet_params(k_p, input_size, hidden_size, output_size)
    packed = pack_subnet_params(params)     # pack once, at "init" time

    # Force the Pallas path at the demo size so the kernel is exercised.
    out = subnet_forward(x, params, last=False, output_size=output_size,
                         packed=packed, use_pallas=True)
    out = jax.block_until_ready(out)

    ref = _reference_forward(x, params)
    assert out.shape == (B, 1, output_size), out.shape
    assert jnp.allclose(out, ref, atol=1e-5, rtol=1e-5), "mismatch vs reference"

    # Exercise the multi-tile / partial-lane-block path (still small).
    B2 = 300
    x2 = jax.random.normal(k_x2, (B2, input_size), jnp.float32)
    out2 = jax.block_until_ready(
        subnet_forward(x2, params, last=False, output_size=output_size,
                       packed=packed, use_pallas=True))
    ref2 = _reference_forward(x2, params)
    assert out2.shape == (B2, 1, output_size), out2.shape
    assert jnp.allclose(out2, ref2, atol=1e-5, rtol=1e-5), "mismatch (B=300)"

    # Also exercise the `last=True` slicing branch (plain JAX).
    out_last = jax.block_until_ready(
        subnet_forward(x, params, last=True, output_size=output_size))
    assert out_last.shape == (B, 1, output_size)

    print("KERNEL_OK")
</pallas_src>

<mosaic_0001>
module attributes {stable_mosaic.version = 11 : i64} {
  func.func @_subnet_kernel(%arg0: i32, %arg1: memref<3xf32, #tpu.memory_space<smem>>, %arg2: memref<7x8xf32, #tpu.memory_space<vmem>>, %arg3: memref<24x1xf32, #tpu.memory_space<vmem>>, %arg4: memref<3x8xf32, #tpu.memory_space<vmem>>) attributes {dimension_semantics = [#tpu.dimension_semantics<parallel>], iteration_bounds = array<i64: 1>, scalar_prefetch = 0 : i64, scratch_operands = 0 : i64, tpu.core_type = #tpu.core_type<tc>, window_params = [{transform_indices = @transform_0, window_bounds = array<i64: 3>}, {transform_indices = @transform_1, window_bounds = array<i64: 7, 8>}, {pipeline_mode = #tpu.pipeline_mode<synchronous>, transform_indices = @transform_2, window_bounds = array<i64: 24, 1>}, {transform_indices = @transform_3, window_bounds = array<i64: 3, 8>}]} {
    %c0 = arith.constant 0 : index
    %c0_0 = arith.constant 0 : index
    %0 = vector.load %arg2[%c0, %c0_0] : memref<7x8xf32, #tpu.memory_space<vmem>>, vector<7x8xf32>
    %c0_1 = arith.constant 0 : index
    %c0_2 = arith.constant 0 : index
    %1 = vector.load %arg3[%c0_1, %c0_2] : memref<24x1xf32, #tpu.memory_space<vmem>>, vector<7x1xf32>
    %2 = vector.broadcast %1 : vector<7x1xf32> to vector<7x8xf32>
    %3 = arith.mulf %0, %2 : vector<7x8xf32>
    %cst = arith.constant dense<0.000000e+00> : vector<8xf32>
    %4 = vector.multi_reduction <add>, %3, %cst [0] : vector<7x8xf32> to vector<8xf32>
    %5 = vector.shape_cast %4 : vector<8xf32> to vector<1x8xf32>
    %c0_3 = arith.constant 0 : index
    %6 = memref.load %arg1[%c0_3] : memref<3xf32, #tpu.memory_space<smem>>
    %7 = vector.broadcast %6 : f32 to vector<1x8xf32>
    %8 = arith.addf %5, %7 : vector<1x8xf32>
    %cst_4 = arith.constant 0.000000e+00 : f32
    %9 = vector.broadcast %cst_4 : f32 to vector<1x8xf32>
    %10 = arith.maximumf %8, %9 : vector<1x8xf32>
    %c1 = arith.constant 1 : index
    %11 = memref.load %arg1[%c1] : memref<3xf32, #tpu.memory_space<smem>>
    %12 = vector.broadcast %11 : f32 to vector<1x8xf32>
    %13 = arith.mulf %10, %12 : vector<1x8xf32>
    %c2 = arith.constant 2 : index
    %14 = memref.load %arg1[%c2] : memref<3xf32, #tpu.memory_space<smem>>
    %15 = vector.broadcast %14 : f32 to vector<1x8xf32>
    %16 = arith.addf %13, %15 : vector<1x8xf32>
    %cst_5 = arith.constant 0.000000e+00 : f32
    %17 = vector.broadcast %cst_5 : f32 to vector<1x8xf32>
    %18 = arith.maximumf %16, %17 : vector<1x8xf32>
    %c8 = arith.constant 8 : index
    %c0_6 = arith.constant 0 : index
    %19 = vector.load %arg3[%c8, %c0_6] : memref<24x1xf32, #tpu.memory_space<vmem>>, vector<3x1xf32>
    %c16 = arith.constant 16 : index
    %c0_7 = arith.constant 0 : index
    %20 = vector.load %arg3[%c16, %c0_7] : memref<24x1xf32, #tpu.memory_space<vmem>>, vector<3x1xf32>
    %21 = vector.broadcast %19 : vector<3x1xf32> to vector<3x8xf32>
    %22 = vector.broadcast %18 : vector<1x8xf32> to vector<3x8xf32>
    %23 = arith.mulf %21, %22 : vector<3x8xf32>
    %24 = vector.broadcast %20 : vector<3x1xf32> to vector<3x8xf32>
    %25 = arith.addf %23, %24 : vector<3x8xf32>
    %c0_8 = arith.constant 0 : index
    %c0_9 = arith.constant 0 : index
    %26 = vector.load %arg4[%c0_8, %c0_9] : memref<3x8xf32, #tpu.memory_space<vmem>>, vector<3x8xf32>
    tpu.vector_store %arg4[%c0_8, %c0_9], %25 {strides = array<i32>} : memref<3x8xf32, #tpu.memory_space<vmem>>, vector<3x8xf32>,
    return
  }
  func.func @transform_0(%arg0: i32) -> i32 {
    %c0_i32 = arith.constant 0 : i32
    %c0_i32_0 = arith.constant 0 : i32
    return %c0_i32 : i32
  }
  func.func @transform_1(%arg0: i32) -> (i32, i32) {
    %c0_i32 = arith.constant 0 : i32
    %c0_i32_0 = arith.constant 0 : i32
    return %c0_i32, %arg0 : i32, i32
  }
  func.func @transform_2(%arg0: i32) -> (i32, i32) {
    %c0_i32 = arith.constant 0 : i32
    %c0_i32_0 = arith.constant 0 : i32
    %c0_i32_1 = arith.constant 0 : i32
    return %c0_i32, %c0_i32_0 : i32, i32
  }
  func.func @transform_3(%arg0: i32) -> (i32, i32) {
    %c0_i32 = arith.constant 0 : i32
    %c0_i32_0 = arith.constant 0 : i32
    return %c0_i32, %arg0 : i32, i32
  }
}

</mosaic_0001>

<bundles_post_ra>
// kernel: tpu_custom_call.1
= control target key start
LH: loop header
LB: loop body
LE: loop exit
PB: predicated region body
PF: predicated region fallthrough
CT: control target
= control target key end

     0   :  { %8 = vsyncpa [#allocation4], 0  ;;  %s170_s0 = inlined_call_operand.vmem [shape: f32[3], index: 0, kind: input, shape index: {}]   ;;  %s171_s1 = inlined_call_operand.vmem [shape: f32[7,8], index: 1, kind: input, shape index: {}]   ;;  %s172_s2 = inlined_call_operand.vmem [shape: f32[24,1], index: 2, kind: input, shape index: {}]   ;;  %s173_s3 = inlined_call_operand.hbm [shape: f32[3,8], index: 3, kind: output, shape index: {}]  }
   0x1   :  { %9 = vsyncpa [#allocation3], 0  ;;  %s16_s14 = sshll.u32 %s170_s0, 4  ;;  %s17_s14 = int_to_ptr.vmem [resolvable:$true] %s16_s14 }
   0x2   :  { %s93_s15 = scalar_lea.vmem %s17_s14, 16  ;;  %p98_p1 = scmp.lt.s32.totalorder %s17_s14, %s17_s14 }
   0x3   :  { %p94_p0 = scmp.ne.s32.totalorder %s17_s14, %s93_s15  ;;  %p99_p2 = scmp.lt.s32.totalorder %s93_s15, %s93_s15 }
   0x5   :  { %p100_p3 = por %p99_p2, %p98_p1 }
   0x7   :  { %p101_p4 = pnand %p100_p3, %p94_p0 }
   0x9   :  { %104 = shalt.err (!%p101_p4)
}
   0xa   :  { %s129_s16 = smov [#allocation2]  }
   0xb   :  { %19 = dma.vmem_to_smem %s17_s14, 16, %s129_s16, [#allocation4]  }
   0xc   :  { %125 = dma.done.wait [#allocation4], 16  }
   0xd   :  { %126 = vsyncadd [#allocation4], 4294967280 }
   0xe   :  { %27 = sfence }
   0xf   :  { %v29_v0 = vld [vmem:[%s172_s2] sm:$0x7f]  ;;  %v130_v1 = vmov 0   ;;  %v56_v2 = vld [vmem:[%s172_s2 + $0x10] sm:$0x7]  ;;  %vm36_vm0 = vcmask 63488  }
  0x10   :  { %91 = vset.pattern.permute.xlu0 %v130_v1  ;;  %92 = vset.pattern.permute.xlu1 %v130_v1  ;;  %v55_v3 = vld [vmem:[%s172_s2 + $0x8] sm:$0x7]  ;;  %v28_v4 = vld [vmem:[%s171_s1] sm:$0x7f]  ;;  %s44_s24 = sld [smem:[#allocation2]]  ;;  %s131_s1 = smov [#allocation5]  }
  0x11   :  { %32 = vperm.xlu0 %91, %v29_v0   ;;  %65 = vperm.xlu1 %92, %v56_v2   ;;  %s86_s25 = sld [smem:[#allocation2 + $0x1]]  ;;  %s77_s2 = sshll.u32 %s131_s1, 4  ;;  %vm69_vm1 = vcmask 59392   ;;  %s78_s2 = int_to_ptr.vmem [resolvable:$true] %s77_s2 }
  0x12   :  { %s87_s26 = sld [smem:[#allocation2 + $0x2]]  ;;  %s105_s27 = scalar_lea.vmem %s78_s2, 64 }
  0x13   :  { %p106_p5 = scmp.ne.s32.totalorder %s78_s2, %s105_s27  ;;  %p110_p6 = scmp.lt.s32.totalorder %s78_s2, %s78_s2 }
  0x14   :  { %p111_p7 = scmp.lt.s32.totalorder %s105_s27, %s105_s27 }
  0x15   :  { %59 = vperm.xlu0 %91, %v55_v3  }
  0x16   :  { %v45_v13 = vstv %s44_s24  ;;  %p112_p8 = por %p111_p7, %p110_p6 }
  0x17   :  { %v49_v16 = vstv %s86_s25 }
  0x18   :  { %v52_v18 = vstv %s87_s26  ;;  %p113_p9 = pnand %p112_p8, %p106_p5 }
  0x8c   :  { %v33_v5 = vpop.permute.xlu0 %32  ;;  %v66_v23 = vpop.permute.xlu1 %65 }
  0x8d   :  { %v35_v6 = vmul.f32 %v33_v5, %v28_v4 }
  0x8f   :  { %v37_v7 = vsel %vm36_vm0, %v35_v6, 0.0 }
  0x90   :  { %v38_v8 = vrot.slane %v37_v7, 4  ;;  %v60_v22 = vpop.permute.xlu0 %59 }
  0x92   :  { %v39_v9 = vadd.f32 %v38_v8, %v37_v7 }
  0x94   :  { %v40_v10 = vrot.slane %v39_v9, 2 }
  0x96   :  { %v41_v11 = vadd.f32 %v40_v10, %v39_v9 }
  0x98   :  { %v42_v12 = vrot.slane %v41_v11, 1 }
  0x9a   :  { %v43_v14 = vadd.f32 %v42_v12, %v41_v11 }
  0x9c   :  { %v46_v15 = vadd.f32 %v45_v13, %v43_v14 }
  0x9e   :  { %v47_v17 = vmax.f32 %v46_v15, 0.0 }
  0xa0   :  { %v50_v19 = vmul.f32 %v49_v16, %v47_v17 }
  0xa2   :  { %v53_v20 = vadd.f32 %v52_v18, %v50_v19 }
  0xa4   :  { %v54_v21 = vmax.f32 %v53_v20, 0.0 }
  0xa6   :  { %v62_v24 = vmul.f32 %v60_v22, %v54_v21 }
  0xa8   :  { %v68_v25 = vadd.f32 %v66_v23, %v62_v24 }
  0xaa   :  { %70 = vst.msk [vmem:[#allocation5] sm:$0x7] %vm69_vm1, %v68_v25 }
  0xab   :  { %116 = shalt.err (!%p113_p9)
}
  0xac   :  { %80 = dma.vmem_to_hbm [thread:$0]  %s78_s2, 64, %s173_s3, [#allocation3]  }
  0xad   :  { %127 = dma.done.wait [#allocation3], 64  }
  0xae   :  { %128 = vsyncadd [#allocation3], 4294967232 }
  0xaf   :  { %84 = vsyncpa [#allocation3], 1 }
  0xb0   :  { %85 = vsyncpa [#allocation4], 1 }

</bundles_post_ra>
